<compile_context>
chip_gen: v7x
topology: tpu7x:2x2x1
jax: 0.10.0
libtpu: 0.0.40
codegen_flags: <defaults>
</compile_context>

<pallas_src>
import functools

import jax
import jax.numpy as jnp
from jax.experimental import pallas as pl
from jax.experimental.pallas import tpu as pltpu

IN_FEATURES = 1024 * 3
H1 = 128
H2 = 64
BN_EPS = 1e-5


def _round_up(n, m):
    return (n + m - 1) // m * m


def _device_kind():
    try:
        return jax.devices()[0].device_kind.lower()
    except Exception:  # pragma: no cover - defensive (non-TPU trace environments)
        return ""


def _choose_block_rows(x_itemsize):
    """Pick the batch-tile size from the per-generation scoped-VMEM budget."""
    kind = _device_kind()
    bytes_per_row = IN_FEATURES * x_itemsize
    if ("v6" in kind) or ("v7" in kind):
        budget = 26 << 20   # 32 MiB scoped default on v6e / v7x, minus weight headroom
    else:
        budget = 12 << 20   # 16 MiB scoped default on v5e (and older): stay safely under
    rows = budget // (2 * bytes_per_row)            # double-buffered x stream
    rows = max(128, min(2048, (rows // 128) * 128)) # keep a sublane-friendly multiple
    return int(rows)


def _net_kernel(x_ref, w1_ref, b1_ref, w2_ref, b2_ref, w3_ref, b3_ref, o_ref):
    """One batch tile: in-kernel bf16 cast -> GEMM -> bias+ReLU -> GEMM -> bias+ReLU -> VPU dot -> sigmoid."""
    # Cast per-tile inside the kernel (no extra HBM round-trip in the wrapper).
    x = x_ref[...].astype(jnp.bfloat16)                                  # [TN, 3072] bf16

    # Linear(3072,128) + folded BN + ReLU (+ Dropout = identity in eval)
    h1 = jnp.dot(x, w1_ref[...], preferred_element_type=jnp.float32)    # MXU, f32 acc
    h1 = jnp.maximum(h1 + b1_ref[...], 0.0)                             # [TN, 128] f32

    # Linear(128,64) + folded BN + ReLU (+ Dropout = identity in eval)
    h2 = jnp.dot(h1.astype(jnp.bfloat16), w2_ref[...],
                 preferred_element_type=jnp.float32)                    # [TN, 64] f32
    h2 = jnp.maximum(h2 + b2_ref[...], 0.0)

    # Linear(64,1): width-1 output -> do it on the VPU/XLU, keep the MXU free.
    logits = jnp.sum(h2 * w3_ref[...], axis=-1, keepdims=True) + b3_ref[...]  # [TN, 1]
    o_ref[...] = jax.nn.sigmoid(logits)


@functools.partial(jax.jit, static_argnames=("block_rows",))
def net_forward(x, params, block_rows=None):
    """x: [N, 3072] float32 or bfloat16 -> [N] float32 (sigmoid probabilities, squeezed)."""
    n = x.shape[0]
    itemsize = jnp.dtype(x.dtype).itemsize
    if block_rows is None:
        block_rows = _choose_block_rows(itemsize)

    # Tile size: full (padded) batch for small inputs, else `block_rows`.
    n8 = _round_up(n, 8)
    tn = min(block_rows, n8)
    # v7x has 2 TensorCores: make sure batches bigger than ~2 sublane-tiles
    # produce >= 2 grid steps so "parallel" can shard tiles across both cores.
    if "v7" in _device_kind() and n8 >= 256:
        tn = min(tn, _round_up(pl.cdiv(n8, 2), 128))

    n_pad = _round_up(n, tn)
    if n_pad != n:
        x = jnp.pad(x, ((0, n_pad - n), (0, 0)))

    grid = (n_pad // tn,)
    out = pl.pallas_call(
        _net_kernel,
        out_shape=jax.ShapeDtypeStruct((n_pad, 1), jnp.float32),
        grid=grid,
        in_specs=[
            # x streams tile-by-tile (native dtype); weights/biases are
            # VMEM-resident (constant block index -> no re-DMA across steps).
            pl.BlockSpec((tn, IN_FEATURES), lambda i: (i, 0)),
            pl.BlockSpec((IN_FEATURES, H1), lambda i: (0, 0)),
            pl.BlockSpec((1, H1), lambda i: (0, 0)),
            pl.BlockSpec((H1, H2), lambda i: (0, 0)),
            pl.BlockSpec((1, H2), lambda i: (0, 0)),
            pl.BlockSpec((1, H2), lambda i: (0, 0)),
            pl.BlockSpec((1, 1), lambda i: (0, 0)),
        ],
        out_specs=pl.BlockSpec((tn, 1), lambda i: (i, 0)),
        compiler_params=pltpu.CompilerParams(
            dimension_semantics=("parallel",),   # lets v7x shard tiles across 2 TCs
        ),
    )(
        x,
        params["w1"], params["b1"],
        params["w2"], params["b2"],
        params["w3"], params["b3"],
    )
    # .squeeze() as in the PyTorch forward (drop the trailing size-1 dim).
    return out[:n, 0]


def _fold_bn(w, b, gamma, beta, mean, var, eps=BN_EPS):
    """Fold eval-mode BatchNorm1d into the preceding Linear (w: [in,out], rest [1,out])."""
    scale = gamma * jax.lax.rsqrt(var + eps)       # [1, out]
    w_f = w * scale                                # scales each output column
    b_f = (b - mean) * scale + beta
    return w_f, b_f


def init_raw_params(key):
    """PyTorch-style init (Linear U(-1/sqrt(fan_in), ...)); W stored as [in, out].

    BN affine/running stats are randomized (instead of the trivial 1/0/0/1
    defaults) so the BN-folding path is actually exercised by the check.
    """
    def linear_init(k, fan_in, fan_out):
        kw, kb = jax.random.split(k)
        bound = 1.0 / jnp.sqrt(jnp.float32(fan_in))
        w = jax.random.uniform(kw, (fan_in, fan_out), jnp.float32, -bound, bound)
        b = jax.random.uniform(kb, (1, fan_out), jnp.float32, -bound, bound)
        return w, b

    k1, k2, k3, kbn1, kbn2 = jax.random.split(key, 5)
    w1, b1 = linear_init(k1, IN_FEATURES, H1)
    w2, b2 = linear_init(k2, H1, H2)
    w3, b3 = linear_init(k3, H2, 1)

    def bn_init(k, dim):
        kg, kb, km, kv = jax.random.split(k, 4)
        g = 1.0 + 0.1 * jax.random.normal(kg, (1, dim), jnp.float32)
        be = 0.1 * jax.random.normal(kb, (1, dim), jnp.float32)
        m = 0.1 * jax.random.normal(km, (1, dim), jnp.float32)
        v = 0.5 + jnp.abs(jax.random.normal(kv, (1, dim), jnp.float32))
        return g, be, m, v

    g1, be1, m1, v1 = bn_init(kbn1, H1)
    g2, be2, m2, v2 = bn_init(kbn2, H2)

    return dict(
        w1=w1, b1=b1, g1=g1, be1=be1, m1=m1, v1=v1,
        w2=w2, b2=b2, g2=g2, be2=be2, m2=m2, v2=v2,
        w3=w3, b3=b3,
    )


def prepare_params(raw):
    """Fold BN into the Linears and cast the MXU weight operands to bf16."""
    w1f, b1f = _fold_bn(raw["w1"], raw["b1"], raw["g1"], raw["be1"], raw["m1"], raw["v1"])
    w2f, b2f = _fold_bn(raw["w2"], raw["b2"], raw["g2"], raw["be2"], raw["m2"], raw["v2"])
    return dict(
        w1=w1f.astype(jnp.bfloat16), b1=b1f.astype(jnp.float32),
        w2=w2f.astype(jnp.bfloat16), b2=b2f.astype(jnp.float32),
        w3=raw["w3"].reshape(1, H2).astype(jnp.float32),   # row vector for the VPU reduce
        b3=raw["b3"].reshape(1, 1).astype(jnp.float32),
    )


def reference_forward(x, raw):
    """Pure-JAX f32 reference (unfolded eval-mode BN) for correctness checking."""
    x = x.astype(jnp.float32)
    h1 = x @ raw["w1"] + raw["b1"]
    h1 = (h1 - raw["m1"]) / jnp.sqrt(raw["v1"] + BN_EPS) * raw["g1"] + raw["be1"]
    h1 = jnp.maximum(h1, 0.0)
    h2 = h1 @ raw["w2"] + raw["b2"]
    h2 = (h2 - raw["m2"]) / jnp.sqrt(raw["v2"] + BN_EPS) * raw["g2"] + raw["be2"]
    h2 = jnp.maximum(h2, 0.0)
    logits = h2 @ raw["w3"] + raw["b3"]
    return jax.nn.sigmoid(logits)[:, 0]


if __name__ == "__main__":
    key = jax.random.PRNGKey(0)
    k_params, k_x1, k_x2 = jax.random.split(key, 3)

    raw = init_raw_params(k_params)
    params = prepare_params(raw)

    # Check 1: small batch, single tile, auto (per-generation) tile sizing.
    batch = 8
    x = jax.random.normal(k_x1, (batch, IN_FEATURES), jnp.float32)
    y = jax.block_until_ready(net_forward(x, params))
    y_ref = reference_forward(x, raw)
    assert y.shape == (batch,), y.shape
    err = float(jnp.max(jnp.abs(y - y_ref)))
    assert err < 2e-2, ("max abs err (single tile)", err)   # relaxed for bf16 matmuls

    # Check 2: multi-tile grid with ragged tail (300 rows, 128-row tiles -> pad to 384).
    batch2 = 300
    x2 = jax.random.normal(k_x2, (batch2, IN_FEATURES), jnp.float32)
    y2 = jax.block_until_ready(net_forward(x2, params, block_rows=128))
    y2_ref = reference_forward(x2, raw)
    assert y2.shape == (batch2,), y2.shape
    err2 = float(jnp.max(jnp.abs(y2 - y2_ref)))
    assert err2 < 2e-2, ("max abs err (tiled)", err2)

    # Check 3: bf16 input streamed directly (no wrapper conversion at all).
    y3 = jax.block_until_ready(net_forward(x2.astype(jnp.bfloat16), params, block_rows=128))
    err3 = float(jnp.max(jnp.abs(y3 - y2_ref)))
    assert y3.shape == (batch2,), y3.shape
    assert err3 < 2e-2, ("max abs err (bf16 input)", err3)

    print("KERNEL_OK")
</pallas_src>

<mosaic_0001>
module attributes {stable_mosaic.version = 11 : i64} {
  func.func @_net_kernel(%arg0: i32, %arg1: memref<8x3072xf32, #tpu.memory_space<vmem>>, %arg2: memref<3072x128xbf16, #tpu.memory_space<vmem>>, %arg3: memref<1x128xf32, #tpu.memory_space<vmem>>, %arg4: memref<128x64xbf16, #tpu.memory_space<vmem>>, %arg5: memref<1x64xf32, #tpu.memory_space<vmem>>, %arg6: memref<1x64xf32, #tpu.memory_space<vmem>>, %arg7: memref<1x1xf32, #tpu.memory_space<vmem>>, %arg8: memref<8x1xf32, #tpu.memory_space<vmem>>) attributes {dimension_semantics = [#tpu.dimension_semantics<parallel>], iteration_bounds = array<i64: 1>, scalar_prefetch = 0 : i64, scratch_operands = 0 : i64, tpu.core_type = #tpu.core_type<tc>, window_params = [{transform_indices = @transform_0, window_bounds = array<i64: 8, 3072>}, {pipeline_mode = #tpu.pipeline_mode<synchronous>, transform_indices = @transform_1, window_bounds = array<i64: 3072, 128>}, {pipeline_mode = #tpu.pipeline_mode<synchronous>, transform_indices = @transform_2, window_bounds = array<i64: 1, 128>}, {pipeline_mode = #tpu.pipeline_mode<synchronous>, transform_indices = @transform_3, window_bounds = array<i64: 128, 64>}, {pipeline_mode = #tpu.pipeline_mode<synchronous>, transform_indices = @transform_4, window_bounds = array<i64: 1, 64>}, {pipeline_mode = #tpu.pipeline_mode<synchronous>, transform_indices = @transform_5, window_bounds = array<i64: 1, 64>}, {pipeline_mode = #tpu.pipeline_mode<synchronous>, transform_indices = @transform_6, window_bounds = array<i64: 1, 1>}, {transform_indices = @transform_7, window_bounds = array<i64: 8, 1>}]} {
    %c0 = arith.constant 0 : index
    %c0_0 = arith.constant 0 : index
    %0 = vector.load %arg1[%c0, %c0_0] : memref<8x3072xf32, #tpu.memory_space<vmem>>, vector<8x3072xf32>
    %1 = arith.truncf %0 : vector<8x3072xf32> to vector<8x3072xbf16>
    %c0_1 = arith.constant 0 : index
    %c0_2 = arith.constant 0 : index
    %2 = vector.load %arg2[%c0_1, %c0_2] : memref<3072x128xbf16, #tpu.memory_space<vmem>>, vector<3072x128xbf16>
    %cst = arith.constant dense<0.000000e+00> : vector<8x128xf32>
    %3 = tpu.matmul %1, %2, %cst {dimension_numbers = #tpu.dot_dimension_numbers<[1], [0], [0], [1], [0, 0, 1, 1], [], []>} : vector<8x3072xbf16>, vector<3072x128xbf16>, vector<8x128xf32> -> vector<8x128xf32>
    %c0_3 = arith.constant 0 : index
    %c0_4 = arith.constant 0 : index
    %4 = vector.load %arg3[%c0_3, %c0_4] : memref<1x128xf32, #tpu.memory_space<vmem>>, vector<1x128xf32>
    %5 = vector.broadcast %4 : vector<1x128xf32> to vector<8x128xf32>
    %6 = arith.addf %3, %5 : vector<8x128xf32>
    %cst_5 = arith.constant 0.000000e+00 : f32
    %7 = vector.broadcast %cst_5 : f32 to vector<8x128xf32>
    %8 = arith.maximumf %6, %7 : vector<8x128xf32>
    %9 = arith.truncf %8 : vector<8x128xf32> to vector<8x128xbf16>
    %c0_6 = arith.constant 0 : index
    %c0_7 = arith.constant 0 : index
    %10 = vector.load %arg4[%c0_6, %c0_7] : memref<128x64xbf16, #tpu.memory_space<vmem>>, vector<128x64xbf16>
    %cst_8 = arith.constant dense<0.000000e+00> : vector<8x64xf32>
    %11 = tpu.matmul %9, %10, %cst_8 {dimension_numbers = #tpu.dot_dimension_numbers<[1], [0], [0], [1], [0, 0, 1, 1], [], []>} : vector<8x128xbf16>, vector<128x64xbf16>, vector<8x64xf32> -> vector<8x64xf32>
    %c0_9 = arith.constant 0 : index
    %c0_10 = arith.constant 0 : index
    %12 = vector.load %arg5[%c0_9, %c0_10] : memref<1x64xf32, #tpu.memory_space<vmem>>, vector<1x64xf32>
    %13 = vector.broadcast %12 : vector<1x64xf32> to vector<8x64xf32>
    %14 = arith.addf %11, %13 : vector<8x64xf32>
    %cst_11 = arith.constant 0.000000e+00 : f32
    %15 = vector.broadcast %cst_11 : f32 to vector<8x64xf32>
    %16 = arith.maximumf %14, %15 : vector<8x64xf32>
    %c0_12 = arith.constant 0 : index
    %c0_13 = arith.constant 0 : index
    %17 = vector.load %arg6[%c0_12, %c0_13] : memref<1x64xf32, #tpu.memory_space<vmem>>, vector<1x64xf32>
    %18 = vector.broadcast %17 : vector<1x64xf32> to vector<8x64xf32>
    %19 = arith.mulf %16, %18 : vector<8x64xf32>
    %cst_14 = arith.constant dense<0.000000e+00> : vector<8xf32>
    %20 = vector.multi_reduction <add>, %19, %cst_14 [1] : vector<8x64xf32> to vector<8xf32>
    %21 = vector.shape_cast %20 : vector<8xf32> to vector<8x1xf32>
    %c0_15 = arith.constant 0 : index
    %c0_16 = arith.constant 0 : index
    %22 = vector.load %arg7[%c0_15, %c0_16] : memref<1x1xf32, #tpu.memory_space<vmem>>, vector<1x1xf32>
    %23 = vector.broadcast %22 : vector<1x1xf32> to vector<8x1xf32>
    %24 = arith.addf %21, %23 : vector<8x1xf32>
    %25 = arith.negf %24 : vector<8x1xf32>
    %26 = math.exp %25 : vector<8x1xf32>
    %cst_17 = arith.constant 1.000000e+00 : f32
    %27 = vector.broadcast %cst_17 : f32 to vector<8x1xf32>
    %28 = arith.addf %27, %26 : vector<8x1xf32>
    %29 = arith.divf %27, %28 : vector<8x1xf32>
    %c0_18 = arith.constant 0 : index
    %c0_19 = arith.constant 0 : index
    %30 = vector.load %arg8[%c0_18, %c0_19] : memref<8x1xf32, #tpu.memory_space<vmem>>, vector<8x1xf32>
    tpu.vector_store %arg8[%c0_18, %c0_19], %29 {strides = array<i32>} : memref<8x1xf32, #tpu.memory_space<vmem>>, vector<8x1xf32>,
    return
  }
  func.func @transform_0(%arg0: i32) -> (i32, i32) {
    %c0_i32 = arith.constant 0 : i32
    %c0_i32_0 = arith.constant 0 : i32
    return %arg0, %c0_i32 : i32, i32
  }
  func.func @transform_1(%arg0: i32) -> (i32, i32) {
    %c0_i32 = arith.constant 0 : i32
    %c0_i32_0 = arith.constant 0 : i32
    %c0_i32_1 = arith.constant 0 : i32
    return %c0_i32, %c0_i32_0 : i32, i32
  }
  func.func @transform_2(%arg0: i32) -> (i32, i32) {
    %c0_i32 = arith.constant 0 : i32
    %c0_i32_0 = arith.constant 0 : i32
    %c0_i32_1 = arith.constant 0 : i32
    return %c0_i32, %c0_i32_0 : i32, i32
  }
  func.func @transform_3(%arg0: i32) -> (i32, i32) {
    %c0_i32 = arith.constant 0 : i32
    %c0_i32_0 = arith.constant 0 : i32
    %c0_i32_1 = arith.constant 0 : i32
    return %c0_i32, %c0_i32_0 : i32, i32
  }
  func.func @transform_4(%arg0: i32) -> (i32, i32) {
    %c0_i32 = arith.constant 0 : i32
    %c0_i32_0 = arith.constant 0 : i32
    %c0_i32_1 = arith.constant 0 : i32
    return %c0_i32, %c0_i32_0 : i32, i32
  }
  func.func @transform_5(%arg0: i32) -> (i32, i32) {
    %c0_i32 = arith.constant 0 : i32
    %c0_i32_0 = arith.constant 0 : i32
    %c0_i32_1 = arith.constant 0 : i32
    return %c0_i32, %c0_i32_0 : i32, i32
  }
  func.func @transform_6(%arg0: i32) -> (i32, i32) {
    %c0_i32 = arith.constant 0 : i32
    %c0_i32_0 = arith.constant 0 : i32
    %c0_i32_1 = arith.constant 0 : i32
    return %c0_i32, %c0_i32_0 : i32, i32
  }
  func.func @transform_7(%arg0: i32) -> (i32, i32) {
    %c0_i32 = arith.constant 0 : i32
    %c0_i32_0 = arith.constant 0 : i32
    return %arg0, %c0_i32 : i32, i32
  }
}

</mosaic_0001>

<bundles_post_ra>
// kernel: net_forward.1
= control target key start
LH: loop header
LB: loop body
LE: loop exit
PB: predicated region body
PF: predicated region fallthrough
CT: control target
= control target key end

     0   :  { %s3146_s0 = inlined_call_operand.hbm [shape: f32[8,3072], index: 0, kind: input, shape index: {}]   ;;  %s3147_s1 = inlined_call_operand.hbm [shape: bf16[3072,128], index: 1, kind: input, shape index: {}]   ;;  %s3148_s2 = inlined_call_operand.vmem [shape: f32[1,128], index: 2, kind: input, shape index: {}]   ;;  %s3149_s3 = inlined_call_operand.vmem [shape: bf16[128,64], index: 3, kind: input, shape index: {}]   ;;  %s3150_s4 = inlined_call_operand.vmem [shape: f32[1,64], index: 4, kind: input, shape index: {}]   ;;  %s3151_s5 = inlined_call_operand.vmem [shape: f32[1,64], index: 5, kind: input, shape index: {}]   ;;  %s3152_s6 = inlined_call_operand.<no memory space> [shape: f32[1,1], index: 6, kind: input, shape index: {}]   ;;  %s3153_s7 = inlined_call_operand.vmem [shape: f32[8,1], index: 7, kind: output, shape index: {}]  }
   0x1   :  { %v12_v0 = vstv %s3152_s6 }
   0x2   :  { %13 = vst [vmem:[#allocation2] sm:$0x1] %v12_v0 }
   0x3   :  { %14 = vsyncpa [#allocation4], 0 }
   0x4   :  { %15 = vsyncpa [#allocation6], 0  ;;  %s3030_s26 = smov [#allocation3]   ;;  %s3031_s28 = smov [#allocation5]  }
   0x5   :  { %s22_s27 = sshll.u32 %s3030_s26, 4  ;;  %s31_s29 = sshll.u32 %s3031_s28, 4  ;;  %s23_s27 = int_to_ptr.vmem [resolvable:$true] %s22_s27  ;;  %s3079_s29 = int_to_ptr.vmem [resolvable:$true] %s31_s29 }
   0x6   :  { %s2982_s9 = scalar_lea.hbm %s3146_s0, 3072 }
   0x7   :  { %p2983_p0 = scmp.ne.s32.totalorder %s3146_s0, %s2982_s9  ;;  %p2986_p1 = scmp.lt.u32.totalorder %s2982_s9, %s3146_s0 }
   0x9   :  { %p2988_p2 = pnand %p2986_p1, %p2983_p0 }
   0xb   :  { %2991 = shalt.err (!%p2988_p2)
}
   0xc   :  { %s2992_s13 = scalar_lea.vmem %s23_s27, 3072  ;;  %p2997_p4 = scmp.lt.s32.totalorder %s23_s27, %s23_s27 }
   0xd   :  { %p2993_p3 = scmp.ne.s32.totalorder %s23_s27, %s2992_s13  ;;  %p2998_p5 = scmp.lt.s32.totalorder %s2992_s13, %s2992_s13 }
   0xf   :  { %p2999_p6 = por %p2998_p5, %p2997_p4 }
  0x11   :  { %p3000_p7 = pnand %p2999_p6, %p2993_p3 }
  0x13   :  { %3003 = shalt.err (!%p3000_p7)
}
  0x14   :  { %25 = dma.hbm_to_vmem [thread:$0]  %s3146_s0, 3072, %s23_s27, [#allocation4]  }
  0x15   :  { %s3004_s18 = scalar_lea.hbm %s3147_s1, 24576 }
  0x16   :  { %p3005_p8 = scmp.ne.s32.totalorder %s3147_s1, %s3004_s18  ;;  %p3008_p9 = scmp.lt.u32.totalorder %s3004_s18, %s3147_s1 }
  0x18   :  { %p3010_p10 = pnand %p3008_p9, %p3005_p8 }
  0x1a   :  { %3013 = shalt.err (!%p3010_p10)
}
  0x1b   :  { %s3014_s23 = scalar_lea.vmem %s3079_s29, 24576  ;;  %p3019_p12 = scmp.lt.s32.totalorder %s3079_s29, %s3079_s29 }
  0x1c   :  { %p3015_p11 = scmp.ne.s32.totalorder %s3079_s29, %s3014_s23  ;;  %p3020_p13 = scmp.lt.s32.totalorder %s3014_s23, %s3014_s23 }
  0x1e   :  { %p3021_p0 = por %p3020_p13, %p3019_p12 }
  0x20   :  { %p3022_p1 = pnand %p3021_p0, %p3015_p11 }
  0x22   :  { %3025 = shalt.err (!%p3022_p1)
}
  0x23   :  { %s3032_s0 = smov 64   ;;  %s3033_s24 = smov 4  }
  0x24   :  { %37 = dma.hbm_to_vmem [thread:$0]  %s3147_s1, 24576, %s3079_s29, [#allocation6], %s3032_s0, %s3032_s0, %s3033_s24  }
  0x25   :  { %3026 = dma.done.wait [#allocation4], 3072  }
  0x26   :  { %3027 = vsyncadd [#allocation4], 4294964224 }
  0x27   :  { %3028 = dma.done.wait [#allocation6], 24576  }
  0x28   :  { %3029 = vsyncadd [#allocation6], 4294942720  ;;  %v2778_v1 = vld [vmem:[#allocation5 + $0x40] sm:$0xff]   ;;  %v2782_v5 = vld [vmem:[#allocation5 + $0x48] sm:$0xff]   ;;  %vm3035_vm0 = vmmov 0   ;;  %vm2248_vm1 = vcmask 523264  }
  0x29   :  { %v2779_v2 = vld [vmem:[#allocation5 + $0xc0] sm:$0xff]   ;;  %2479 = vmatprep.subr.bf16.mxu0 %v2778_v1  ;;  %v2783_v6 = vld [vmem:[#allocation5 + $0xc8] sm:$0xff]   ;;  %v2786_v9 = vld [vmem:[#allocation5 + $0x50] sm:$0xff]   ;;  %vm2266_vm2 = vcmask 7168  }
  0x2a   :  { %v2780_v3 = vld [vmem:[#allocation5] sm:$0xff]   ;;  %2501 = vmatprep.subr.bf16.mxu1 %v2779_v2  ;;  %v2784_v7 = vld [vmem:[#allocation5 + $0x8] sm:$0xff]   ;;  %v2787_v10 = vld [vmem:[#allocation5 + $0xd0] sm:$0xff]  }
  0x2b   :  { %v2781_v4 = vld [vmem:[#allocation5 + $0x80] sm:$0xff]   ;;  %2480 = vmatpush3.bf16.msra.mxu0 %v2780_v3  ;;  %v2785_v8 = vld [vmem:[#allocation5 + $0x88] sm:$0xff]   ;;  %v2788_v11 = vld [vmem:[#allocation5 + $0x10] sm:$0xff]  }
  0x2c   :  { %2502 = vmatpush3.bf16.msra.mxu1 %v2781_v4  ;;  %2481 = vmatprep.subr.bf16.mxu0 %v2782_v5  ;;  %v2789_v12 = vld [vmem:[#allocation5 + $0x90] sm:$0xff]   ;;  %v2790_v13 = vld [vmem:[#allocation5 + $0x58] sm:$0xff]   ;;  %v2794_v17 = vld [vmem:[#allocation5 + $0x60] sm:$0xff]  }
  0x2d   :  { %2503 = vmatprep.subr.bf16.mxu1 %v2783_v6  ;;  %v2791_v14 = vld [vmem:[#allocation5 + $0xd8] sm:$0xff]   ;;  %v2795_v18 = vld [vmem:[#allocation5 + $0xe0] sm:$0xff]   ;;  %v2798_v21 = vld [vmem:[#allocation5 + $0x68] sm:$0xff]  }
  0x2e   :  { %v2792_v15 = vld [vmem:[#allocation5 + $0x18] sm:$0xff]   ;;  %v2796_v19 = vld [vmem:[#allocation5 + $0x20] sm:$0xff]   ;;  %v2799_v22 = vld [vmem:[#allocation5 + $0xe8] sm:$0xff]  }
  0x2f   :  { %2482 = vmatpush3.bf16.msra.mxu0 %v2784_v7  ;;  %v2793_v16 = vld [vmem:[#allocation5 + $0x98] sm:$0xff]   ;;  %v2797_v20 = vld [vmem:[#allocation5 + $0xa0] sm:$0xff]   ;;  %v2800_v23 = vld [vmem:[#allocation5 + $0x28] sm:$0xff]  }
  0x30   :  { %2504 = vmatpush3.bf16.msra.mxu1 %v2785_v8  ;;  %2483 = vmatprep.subr.bf16.mxu0 %v2786_v9  ;;  %v2801_v24 = vld [vmem:[#allocation5 + $0xa8] sm:$0xff]   ;;  %v2802_v25 = vld [vmem:[#allocation5 + $0x70] sm:$0xff]   ;;  %v2806_v29 = vld [vmem:[#allocation5 + $0x78] sm:$0xff]  }
  0x31   :  { %2505 = vmatprep.subr.bf16.mxu1 %v2787_v10  ;;  %v2803_v26 = vld [vmem:[#allocation5 + $0xf0] sm:$0xff]   ;;  %v2807_v30 = vld [vmem:[#allocation5 + $0xf8] sm:$0xff]   ;;  %v56_v33 = vld [vmem:[#allocation3 + $0x8] sm:$0xff] }
  0x32   :  { %v2804_v27 = vld [vmem:[#allocation5 + $0x30] sm:$0xff]   ;;  %v2808_v31 = vld [vmem:[#allocation5 + $0x38] sm:$0xff]   ;;  %v55_v35 = vld [vmem:[#allocation3] sm:$0xff]  ;;  %v80_v36 = vpack.c.bf16 %v56_v33, %v56_v33 }
  0x33   :  { %2484 = vmatpush3.bf16.msra.mxu0 %v2788_v11  ;;  %v2805_v28 = vld [vmem:[#allocation5 + $0xb0] sm:$0xff]   ;;  %v2809_v32 = vld [vmem:[#allocation5 + $0xb8] sm:$0xff]   ;;  %v79_v38 = vpack.c.bf16 %v55_v35, %v55_v35  ;;  %v2810_v41 = vld [vmem:[#allocation5 + $0x140] sm:$0xff]  }
  0x34   :  { %2506 = vmatpush3.bf16.msra.mxu1 %v2789_v12  ;;  %2485 = vmatprep.subr.bf16.mxu0 %v2790_v13  ;;  %v58_v34 = vld [vmem:[#allocation3 + $0x18] sm:$0xff]  ;;  %v57_v39 = vld [vmem:[#allocation3 + $0x10] sm:$0xff]  ;;  %v2811_v42 = vld [vmem:[#allocation5 + $0x1c0] sm:$0xff]  }
  0x35   :  { %2507 = vmatprep.subr.bf16.mxu1 %v2791_v14  ;;  %v82_v37 = vpack.c.bf16 %v58_v34, %v58_v34  ;;  %v81_v40 = vpack.c.bf16 %v57_v39, %v57_v39  ;;  %1678 = vmatprep.mubr.bf16.mxu0 %v80_v36  ;;  %v2812_v43 = vld [vmem:[#allocation5 + $0x100] sm:$0xff]   ;;  %v2814_v45 = vld [vmem:[#allocation5 + $0x148] sm:$0xff]   ;;  %v2818_v49 = vld [vmem:[#allocation5 + $0x150] sm:$0xff]  }
  0x36   :  { %v2813_v44 = vld [vmem:[#allocation5 + $0x180] sm:$0xff]   ;;  %v2815_v46 = vld [vmem:[#allocation5 + $0x1c8] sm:$0xff]   ;;  %v2819_v50 = vld [vmem:[#allocation5 + $0x1d0] sm:$0xff]  }
  0x37   :  { %2486 = vmatpush3.bf16.msra.mxu0 %v2792_v15  ;;  %1718 = vmatprep.mubr.bf16.mxu1 %v82_v37  ;;  %v2816_v47 = vld [vmem:[#allocation5 + $0x108] sm:$0xff]   ;;  %v2820_v51 = vld [vmem:[#allocation5 + $0x110] sm:$0xff]   ;;  %v2822_v53 = vld [vmem:[#allocation5 + $0x158] sm:$0xff]  }
  0x38   :  { %2508 = vmatpush3.bf16.msra.mxu1 %v2793_v16  ;;  %2487 = vmatprep.subr.bf16.mxu0 %v2794_v17  ;;  %v2817_v48 = vld [vmem:[#allocation5 + $0x188] sm:$0xff]   ;;  %v2821_v52 = vld [vmem:[#allocation5 + $0x190] sm:$0xff]   ;;  %v2823_v54 = vld [vmem:[#allocation5 + $0x1d8] sm:$0xff]  }
  0x39   :  { %2509 = vmatprep.subr.bf16.mxu1 %v2795_v18  ;;  %v2824_v55 = vld [vmem:[#allocation5 + $0x118] sm:$0xff]   ;;  %v2826_v57 = vld [vmem:[#allocation5 + $0x160] sm:$0xff]   ;;  %v2830_v61 = vld [vmem:[#allocation5 + $0x168] sm:$0xff]  }
  0x3a   :  { %v2825_v56 = vld [vmem:[#allocation5 + $0x198] sm:$0xff]   ;;  %v2827_v58 = vld [vmem:[#allocation5 + $0x1e0] sm:$0xff]   ;;  %v2831_v62 = vld [vmem:[#allocation5 + $0x1e8] sm:$0xff]  }
  0x3b   :  { %2488 = vmatpush3.bf16.msra.mxu0 %v2796_v19  ;;  %v2828_v59 = vld [vmem:[#allocation5 + $0x120] sm:$0xff]   ;;  %v2832_v63 = vld [vmem:[#allocation5 + $0x128] sm:$0xff]   ;;  %v2834_v1 = vld [vmem:[#allocation5 + $0x170] sm:$0xff]  }
  0x3c   :  { %2510 = vmatpush3.bf16.msra.mxu1 %v2797_v20  ;;  %2489 = vmatprep.subr.bf16.mxu0 %v2798_v21  ;;  %v2829_v60 = vld [vmem:[#allocation5 + $0x1a0] sm:$0xff]   ;;  %v2833_v0 = vld [vmem:[#allocation5 + $0x1a8] sm:$0xff]   ;;  %v2835_v2 = vld [vmem:[#allocation5 + $0x1f0] sm:$0xff]  }
  0x3d   :  { %2511 = vmatprep.subr.bf16.mxu1 %v2799_v22  ;;  %v2836_v3 = vld [vmem:[#allocation5 + $0x130] sm:$0xff]   ;;  %v2838_v5 = vld [vmem:[#allocation5 + $0x178] sm:$0xff]   ;;  %v60_v9 = vld [vmem:[#allocation3 + $0x28] sm:$0xff] }
  0x3e   :  { %v2837_v4 = vld [vmem:[#allocation5 + $0x1b0] sm:$0xff]   ;;  %v2839_v6 = vld [vmem:[#allocation5 + $0x1f8] sm:$0xff]   ;;  %v84_v11 = vpack.c.bf16 %v60_v9, %v60_v9  ;;  %v59_v13 = vld [vmem:[#allocation3 + $0x20] sm:$0xff] }
  0x3f   :  { %2490 = vmatpush3.bf16.msra.mxu0 %v2800_v23  ;;  %v2840_v7 = vld [vmem:[#allocation5 + $0x138] sm:$0xff]   ;;  %v61_v14 = vld [vmem:[#allocation3 + $0x30] sm:$0xff]  ;;  %v83_v15 = vpack.c.bf16 %v59_v13, %v59_v13  ;;  %v2842_v17 = vld [vmem:[#allocation5 + $0x240] sm:$0xff]  }
  0x40   :  { %2512 = vmatpush3.bf16.msra.mxu1 %v2801_v24  ;;  %2491 = vmatprep.subr.bf16.mxu0 %v2802_v25  ;;  %v2841_v8 = vld [vmem:[#allocation5 + $0x1b8] sm:$0xff]   ;;  %v85_v16 = vpack.c.bf16 %v61_v14, %v61_v14  ;;  %v2843_v18 = vld [vmem:[#allocation5 + $0x2c0] sm:$0xff]   ;;  %v2846_v21 = vld [vmem:[#allocation5 + $0x248] sm:$0xff]  }
  0x41   :  { %2513 = vmatprep.subr.bf16.mxu1 %v2803_v26  ;;  %v62_v10 = vld [vmem:[#allocation3 + $0x38] sm:$0xff]  ;;  %v2844_v19 = vld [vmem:[#allocation5 + $0x200] sm:$0xff]   ;;  %v2847_v22 = vld [vmem:[#allocation5 + $0x2c8] sm:$0xff]  }
  0x42   :  { %v86_v12 = vpack.c.bf16 %v62_v10, %v62_v10  ;;  %v2845_v20 = vld [vmem:[#allocation5 + $0x280] sm:$0xff]   ;;  %v2848_v23 = vld [vmem:[#allocation5 + $0x208] sm:$0xff]   ;;  %v2850_v25 = vld [vmem:[#allocation5 + $0x250] sm:$0xff]  }
  0x43   :  { %2492 = vmatpush3.bf16.msra.mxu0 %v2804_v27  ;;  %v2849_v24 = vld [vmem:[#allocation5 + $0x288] sm:$0xff]   ;;  %v2851_v26 = vld [vmem:[#allocation5 + $0x2d0] sm:$0xff]   ;;  %v2858_v33 = vld [vmem:[#allocation5 + $0x260] sm:$0xff]  }
  0x44   :  { %2514 = vmatpush3.bf16.msra.mxu1 %v2805_v28  ;;  %2493 = vmatprep.subr.bf16.mxu0 %v2806_v29  ;;  %v2852_v27 = vld [vmem:[#allocation5 + $0x210] sm:$0xff]   ;;  %v2854_v29 = vld [vmem:[#allocation5 + $0x258] sm:$0xff]   ;;  %v2859_v34 = vld [vmem:[#allocation5 + $0x2e0] sm:$0xff]  }
  0x45   :  { %2515 = vmatprep.subr.bf16.mxu1 %v2807_v30  ;;  %v2853_v28 = vld [vmem:[#allocation5 + $0x290] sm:$0xff]   ;;  %v2855_v30 = vld [vmem:[#allocation5 + $0x2d8] sm:$0xff]   ;;  %v2860_v35 = vld [vmem:[#allocation5 + $0x220] sm:$0xff]  }
  0x46   :  { %v2861_v36 = vld [vmem:[#allocation5 + $0x2a0] sm:$0xff]   ;;  %v2862_v37 = vld [vmem:[#allocation5 + $0x268] sm:$0xff]  }
  0x47   :  { %2494 = vmatpush3.bf16.msra.mxu0 %v2808_v31  ;;  %v2856_v31 = vld [vmem:[#allocation5 + $0x218] sm:$0xff]   ;;  %v2864_v39 = vld [vmem:[#allocation5 + $0x228] sm:$0xff]   ;;  %v2890_v9 = vld [vmem:[#allocation5 + $0x360] sm:$0xff]  }
  0x48   :  { %2516 = vmatpush3.bf16.msra.mxu1 %v2809_v32  ;;  %2523 = vmatprep.subr.bf16.mxu0 %v2810_v41  ;;  %v2857_v32 = vld [vmem:[#allocation5 + $0x298] sm:$0xff]   ;;  %v2866_v41 = vld [vmem:[#allocation5 + $0x270] sm:$0xff]   ;;  %v2891_v10 = vld [vmem:[#allocation5 + $0x3e0] sm:$0xff]  }
  0x49   :  { %2545 = vmatprep.subr.bf16.mxu1 %v2811_v42  ;;  %v2867_v42 = vld [vmem:[#allocation5 + $0x2f0] sm:$0xff]   ;;  %v2894_v13 = vld [vmem:[#allocation5 + $0x368] sm:$0xff]  }
  0x4a   :  { %1679 = vmatmul.mubr.bf16.vlgmr.msra.gmra.mrb[0].mxu0 %v79_v38  ;;  %v2863_v38 = vld [vmem:[#allocation5 + $0x2e8] sm:$0xff]  }
  0x4b   :  { %1719 = vmatmul.mubr.bf16.vlgmr.msra.gmra.mrb[0].mxu1 %v81_v40  ;;  %2524 = vmatpush3.bf16.msra.mxu0 %v2812_v43  ;;  %v2865_v40 = vld [vmem:[#allocation5 + $0x2a8] sm:$0xff]   ;;  %v2868_v43 = vld [vmem:[#allocation5 + $0x230] sm:$0xff]  }
  0x4c   :  { %2546 = vmatpush3.bf16.msra.mxu1 %v2813_v44  ;;  %2525 = vmatprep.subr.bf16.mxu0 %v2814_v45  ;;  %v2869_v44 = vld [vmem:[#allocation5 + $0x2b0] sm:$0xff]   ;;  %v2870_v45 = vld [vmem:[#allocation5 + $0x278] sm:$0xff]   ;;  %v2895_v14 = vld [vmem:[#allocation5 + $0x3e8] sm:$0xff]  }
  0x4d   :  { %2547 = vmatprep.subr.bf16.mxu1 %v2815_v46  ;;  %1758 = vmatprep.mubr.bf16.mxu0 %v84_v11  ;;  %v2871_v46 = vld [vmem:[#allocation5 + $0x2f8] sm:$0xff]   ;;  %v2892_v11 = vld [vmem:[#allocation5 + $0x320] sm:$0xff]  }
  0x4e   :  { %1798 = vmatprep.mubr.bf16.mxu1 %v86_v12  ;;  %v2893_v12 = vld [vmem:[#allocation5 + $0x3a0] sm:$0xff]  }
  0x4f   :  { %2526 = vmatpush3.bf16.msra.mxu0 %v2816_v47  ;;  %v2872_v47 = vld [vmem:[#allocation5 + $0x238] sm:$0xff]  }
  0x50   :  { %2548 = vmatpush3.bf16.msra.mxu1 %v2817_v48  ;;  %2527 = vmatprep.subr.bf16.mxu0 %v2818_v49  ;;  %v2873_v48 = vld [vmem:[#allocation5 + $0x2b8] sm:$0xff]   ;;  %v64_v49 = vld [vmem:[#allocation3 + $0x48] sm:$0xff] }
  0x51   :  { %2549 = vmatprep.subr.bf16.mxu1 %v2819_v50  ;;  %v88_v50 = vpack.c.bf16 %v64_v49, %v64_v49  ;;  %v2922_v49 = vld [vmem:[#allocation5 + $0x460] sm:$0xff]  }
  0x53   :  { %2528 = vmatpush3.bf16.msra.mxu0 %v2820_v51  ;;  %v66_v51 = vld [vmem:[#allocation3 + $0x58] sm:$0xff] }
  0x54   :  { %2550 = vmatpush3.bf16.msra.mxu1 %v2821_v52  ;;  %2529 = vmatprep.subr.bf16.mxu0 %v2822_v53  ;;  %v63_v52 = vld [vmem:[#allocation3 + $0x40] sm:$0xff]  ;;  %v65_v53 = vld [vmem:[#allocation3 + $0x50] sm:$0xff] }
  0x55   :  { %2551 = vmatprep.subr.bf16.mxu1 %v2823_v54  ;;  %v90_v54 = vpack.c.bf16 %v66_v51, %v66_v51  ;;  %v2924_v51 = vld [vmem:[#allocation5 + $0x420] sm:$0xff]  }
  0x57   :  { %2530 = vmatpush3.bf16.msra.mxu0 %v2824_v55  ;;  %v87_v55 = vpack.c.bf16 %v63_v52, %v63_v52  ;;  %v2925_v52 = vld [vmem:[#allocation5 + $0x4a0] sm:$0xff]  }
  0x58   :  { %2552 = vmatpush3.bf16.msra.mxu1 %v2825_v56  ;;  %2531 = vmatprep.subr.bf16.mxu0 %v2826_v57  ;;  %v89_v56 = vpack.c.bf16 %v65_v53, %v65_v53  ;;  %v2874_v57 = vld [vmem:[#allocation5 + $0x340] sm:$0xff]   ;;  %v2926_v53 = vld [vmem:[#allocation5 + $0x468] sm:$0xff]  }
  0x59   :  { %2553 = vmatprep.subr.bf16.mxu1 %v2827_v58  ;;  %v2875_v58 = vld [vmem:[#allocation5 + $0x3c0] sm:$0xff]  }
  0x5b   :  { %2532 = vmatpush3.bf16.msra.mxu0 %v2828_v59  ;;  %v2876_v59 = vld [vmem:[#allocation5 + $0x300] sm:$0xff]  }
  0x5c   :  { %2554 = vmatpush3.bf16.msra.mxu1 %v2829_v60  ;;  %2533 = vmatprep.subr.bf16.mxu0 %v2830_v61  ;;  %v2877_v60 = vld [vmem:[#allocation5 + $0x380] sm:$0xff]   ;;  %v2878_v61 = vld [vmem:[#allocation5 + $0x348] sm:$0xff]  }
  0x5d   :  { %2555 = vmatprep.subr.bf16.mxu1 %v2831_v62  ;;  %v2879_v62 = vld [vmem:[#allocation5 + $0x3c8] sm:$0xff]  }
  0x5f   :  { %2534 = vmatpush3.bf16.msra.mxu0 %v2832_v63  ;;  %v2880_v63 = vld [vmem:[#allocation5 + $0x308] sm:$0xff]  }
  0x60   :  { %2556 = vmatpush3.bf16.msra.mxu1 %v2833_v0  ;;  %2535 = vmatprep.subr.bf16.mxu0 %v2834_v1  ;;  %v2881_v0 = vld [vmem:[#allocation5 + $0x388] sm:$0xff]   ;;  %v2882_v1 = vld [vmem:[#allocation5 + $0x350] sm:$0xff]  }
  0x61   :  { %2557 = vmatprep.subr.bf16.mxu1 %v2835_v2  ;;  %v2883_v2 = vld [vmem:[#allocation5 + $0x3d0] sm:$0xff]  }
  0x63   :  { %2536 = vmatpush3.bf16.msra.mxu0 %v2836_v3  ;;  %v2884_v3 = vld [vmem:[#allocation5 + $0x310] sm:$0xff]  }
  0x64   :  { %2558 = vmatpush3.bf16.msra.mxu1 %v2837_v4  ;;  %2537 = vmatprep.subr.bf16.mxu0 %v2838_v5  ;;  %v2885_v4 = vld [vmem:[#allocation5 + $0x390] sm:$0xff]   ;;  %v2886_v5 = vld [vmem:[#allocation5 + $0x358] sm:$0xff]  }
  0x65   :  { %2559 = vmatprep.subr.bf16.mxu1 %v2839_v6  ;;  %v2887_v6 = vld [vmem:[#allocation5 + $0x3d8] sm:$0xff]  }
  0x67   :  { %2538 = vmatpush3.bf16.msra.mxu0 %v2840_v7  ;;  %v2888_v7 = vld [vmem:[#allocation5 + $0x318] sm:$0xff]  }
  0x68   :  { %2560 = vmatpush3.bf16.msra.mxu1 %v2841_v8  ;;  %2567 = vmatprep.subr.bf16.mxu0 %v2842_v17  ;;  %v2889_v8 = vld [vmem:[#allocation5 + $0x398] sm:$0xff]   ;;  %v2898_v17 = vld [vmem:[#allocation5 + $0x370] sm:$0xff]  }
  0x69   :  { %2589 = vmatprep.subr.bf16.mxu1 %v2843_v18  ;;  %v2899_v18 = vld [vmem:[#allocation5 + $0x3f0] sm:$0xff]  }
  0x6a   :  { %1759 = vmatmul.mubr.bf16.vlgmr.msra.gmra.mrb[4].mxu0 %v83_v15  ;;  %v2896_v15 = vld [vmem:[#allocation5 + $0x328] sm:$0xff]  }
  0x6b   :  { %1799 = vmatmul.mubr.bf16.vlgmr.msra.gmra.mrb[4].mxu1 %v85_v16  ;;  %2568 = vmatpush3.bf16.msra.mxu0 %v2844_v19  ;;  %v2897_v16 = vld [vmem:[#allocation5 + $0x3a8] sm:$0xff]   ;;  %v2900_v19 = vld [vmem:[#allocation5 + $0x330] sm:$0xff]  }
  0x6c   :  { %2590 = vmatpush3.bf16.msra.mxu1 %v2845_v20  ;;  %2569 = vmatprep.subr.bf16.mxu0 %v2846_v21  ;;  %v2901_v20 = vld [vmem:[#allocation5 + $0x3b0] sm:$0xff]   ;;  %v2902_v21 = vld [vmem:[#allocation5 + $0x378] sm:$0xff]  }
  0x6d   :  { %2591 = vmatprep.subr.bf16.mxu1 %v2847_v22  ;;  %1838 = vmatprep.mubr.bf16.mxu0 %v88_v50  ;;  %v2903_v22 = vld [vmem:[#allocation5 + $0x3f8] sm:$0xff]   ;;  %v2923_v50 = vld [vmem:[#allocation5 + $0x4e0] sm:$0xff]  }
  0x6e   :  { %1878 = vmatprep.mubr.bf16.mxu1 %v90_v54  ;;  %v2927_v54 = vld [vmem:[#allocation5 + $0x4e8] sm:$0xff]  }
  0x6f   :  { %2570 = vmatpush3.bf16.msra.mxu0 %v2848_v23  ;;  %v2904_v23 = vld [vmem:[#allocation5 + $0x338] sm:$0xff]  }
  0x70   :  { %2592 = vmatpush3.bf16.msra.mxu1 %v2849_v24  ;;  %2571 = vmatprep.subr.bf16.mxu0 %v2850_v25  ;;  %v2905_v24 = vld [vmem:[#allocation5 + $0x3b8] sm:$0xff]   ;;  %v68_v25 = vld [vmem:[#allocation3 + $0x68] sm:$0xff] }
  0x71   :  { %2593 = vmatprep.subr.bf16.mxu1 %v2851_v26  ;;  %v70_v26 = vld [vmem:[#allocation3 + $0x78] sm:$0xff] }
  0x73   :  { %2572 = vmatpush3.bf16.msra.mxu0 %v2852_v27  ;;  %v67_v27 = vld [vmem:[#allocation3 + $0x60] sm:$0xff] }
  0x74   :  { %2594 = vmatpush3.bf16.msra.mxu1 %v2853_v28  ;;  %2573 = vmatprep.subr.bf16.mxu0 %v2854_v29  ;;  %v92_v28 = vpack.c.bf16 %v68_v25, %v68_v25  ;;  %v94_v29 = vpack.c.bf16 %v70_v26, %v70_v26  ;;  %v2954_v25 = vld [vmem:[#allocation5 + $0x560] sm:$0xff]  }
  0x75   :  { %2595 = vmatprep.subr.bf16.mxu1 %v2855_v30  ;;  %v91_v30 = vpack.c.bf16 %v67_v27, %v67_v27  ;;  %v2955_v26 = vld [vmem:[#allocation5 + $0x5e0] sm:$0xff]  }
  0x76   :  { %v2956_v27 = vld [vmem:[#allocation5 + $0x520] sm:$0xff]  }
  0x77   :  { %2574 = vmatpush3.bf16.msra.mxu0 %v2856_v31  ;;  %v69_v31 = vld [vmem:[#allocation3 + $0x70] sm:$0xff] }
  0x78   :  { %2596 = vmatpush3.bf16.msra.mxu1 %v2857_v32  ;;  %2575 = vmatprep.subr.bf16.mxu0 %v2858_v33  ;;  %v93_v32 = vpack.c.bf16 %v69_v31, %v69_v31  ;;  %v2906_v33 = vld [vmem:[#allocation5 + $0x440] sm:$0xff]   ;;  %v2960_v31 = vld [vmem:[#allocation5 + $0x528] sm:$0xff]  }
  0x79   :  { %2597 = vmatprep.subr.bf16.mxu1 %v2859_v34  ;;  %v2907_v34 = vld [vmem:[#allocation5 + $0x4c0] sm:$0xff]  }
  0x7b   :  { %2576 = vmatpush3.bf16.msra.mxu0 %v2860_v35  ;;  %v2908_v35 = vld [vmem:[#allocation5 + $0x400] sm:$0xff]  }
  0x7c   :  { %2598 = vmatpush3.bf16.msra.mxu1 %v2861_v36  ;;  %2577 = vmatprep.subr.bf16.mxu0 %v2862_v37  ;;  %v2909_v36 = vld [vmem:[#allocation5 + $0x480] sm:$0xff]   ;;  %v2910_v37 = vld [vmem:[#allocation5 + $0x448] sm:$0xff]  }
  0x7d   :  { %2599 = vmatprep.subr.bf16.mxu1 %v2863_v38  ;;  %v2911_v38 = vld [vmem:[#allocation5 + $0x4c8] sm:$0xff]  }
  0x7f   :  { %2578 = vmatpush3.bf16.msra.mxu0 %v2864_v39  ;;  %v2912_v39 = vld [vmem:[#allocation5 + $0x408] sm:$0xff]  }
  0x80   :  { %2600 = vmatpush3.bf16.msra.mxu1 %v2865_v40  ;;  %2579 = vmatprep.subr.bf16.mxu0 %v2866_v41  ;;  %v2913_v40 = vld [vmem:[#allocation5 + $0x488] sm:$0xff]   ;;  %v2914_v41 = vld [vmem:[#allocation5 + $0x450] sm:$0xff]  }
  0x81   :  { %2601 = vmatprep.subr.bf16.mxu1 %v2867_v42  ;;  %v2915_v42 = vld [vmem:[#allocation5 + $0x4d0] sm:$0xff]  }
  0x83   :  { %2580 = vmatpush3.bf16.msra.mxu0 %v2868_v43  ;;  %v2916_v43 = vld [vmem:[#allocation5 + $0x410] sm:$0xff]  }
  0x84   :  { %2602 = vmatpush3.bf16.msra.mxu1 %v2869_v44  ;;  %2581 = vmatprep.subr.bf16.mxu0 %v2870_v45  ;;  %v2917_v44 = vld [vmem:[#allocation5 + $0x490] sm:$0xff]   ;;  %v2918_v45 = vld [vmem:[#allocation5 + $0x458] sm:$0xff]  }
  0x85   :  { %2603 = vmatprep.subr.bf16.mxu1 %v2871_v46  ;;  %v2919_v46 = vld [vmem:[#allocation5 + $0x4d8] sm:$0xff]  }
  0x87   :  { %2582 = vmatpush3.bf16.msra.mxu0 %v2872_v47  ;;  %v2920_v47 = vld [vmem:[#allocation5 + $0x418] sm:$0xff]  }
  0x88   :  { %2604 = vmatpush3.bf16.msra.mxu1 %v2873_v48  ;;  %2611 = vmatprep.subr.bf16.mxu0 %v2874_v57  ;;  %v2921_v48 = vld [vmem:[#allocation5 + $0x498] sm:$0xff]   ;;  %v2930_v57 = vld [vmem:[#allocation5 + $0x470] sm:$0xff]  }
  0x89   :  { %2633 = vmatprep.subr.bf16.mxu1 %v2875_v58  ;;  %v2931_v58 = vld [vmem:[#allocation5 + $0x4f0] sm:$0xff]  }
  0x8a   :  { %1839 = vmatmul.mubr.bf16.vlgmr.msra.gmra.mrb[8].mxu0 %v87_v55  ;;  %v2928_v55 = vld [vmem:[#allocation5 + $0x428] sm:$0xff]  }
  0x8b   :  { %1879 = vmatmul.mubr.bf16.vlgmr.msra.gmra.mrb[8].mxu1 %v89_v56  ;;  %2612 = vmatpush3.bf16.msra.mxu0 %v2876_v59  ;;  %v2929_v56 = vld [vmem:[#allocation5 + $0x4a8] sm:$0xff]   ;;  %v2932_v59 = vld [vmem:[#allocation5 + $0x430] sm:$0xff]  }
  0x8c   :  { %2634 = vmatpush3.bf16.msra.mxu1 %v2877_v60  ;;  %2613 = vmatprep.subr.bf16.mxu0 %v2878_v61  ;;  %v2933_v60 = vld [vmem:[#allocation5 + $0x4b0] sm:$0xff]   ;;  %v2934_v61 = vld [vmem:[#allocation5 + $0x478] sm:$0xff]  }
  0x8d   :  { %2635 = vmatprep.subr.bf16.mxu1 %v2879_v62  ;;  %1918 = vmatprep.mubr.bf16.mxu0 %v92_v28  ;;  %v2935_v62 = vld [vmem:[#allocation5 + $0x4f8] sm:$0xff]   ;;  %v2957_v28 = vld [vmem:[#allocation5 + $0x5a0] sm:$0xff]  }
  0x8e   :  { %1958 = vmatprep.mubr.bf16.mxu1 %v94_v29  ;;  %v2958_v29 = vld [vmem:[#allocation5 + $0x568] sm:$0xff]  }
  0x8f   :  { %2614 = vmatpush3.bf16.msra.mxu0 %v2880_v63  ;;  %v2936_v63 = vld [vmem:[#allocation5 + $0x438] sm:$0xff]  }
  0x90   :  { %2636 = vmatpush3.bf16.msra.mxu1 %v2881_v0  ;;  %2615 = vmatprep.subr.bf16.mxu0 %v2882_v1  ;;  %v2937_v0 = vld [vmem:[#allocation5 + $0x4b8] sm:$0xff]   ;;  %v72_v1 = vld [vmem:[#allocation3 + $0x88] sm:$0xff] }
  0x91   :  { %2637 = vmatprep.subr.bf16.mxu1 %v2883_v2  ;;  %v74_v2 = vld [vmem:[#allocation3 + $0x98] sm:$0xff] }
  0x93   :  { %2616 = vmatpush3.bf16.msra.mxu0 %v2884_v3  ;;  %v96_v3 = vpack.c.bf16 %v72_v1, %v72_v1  ;;  %v2972_v1 = vld [vmem:[%s3149_s3 + $0x10] sm:$0xff]  }
  0x94   :  { %2638 = vmatpush3.bf16.msra.mxu1 %v2885_v4  ;;  %2617 = vmatprep.subr.bf16.mxu0 %v2886_v5  ;;  %v98_v4 = vpack.c.bf16 %v74_v2, %v74_v2  ;;  %v71_v5 = vld [vmem:[#allocation3 + $0x80] sm:$0xff]  ;;  %v2973_v2 = vld [vmem:[%s3149_s3 + $0x18] sm:$0xff]  }
  0x95   :  { %2639 = vmatprep.subr.bf16.mxu1 %v2887_v6  ;;  %v73_v6 = vld [vmem:[#allocation3 + $0x90] sm:$0xff] }
  0x97   :  { %2618 = vmatpush3.bf16.msra.mxu0 %v2888_v7  ;;  %v95_v7 = vpack.c.bf16 %v71_v5, %v71_v5 }
  0x98   :  { %2640 = vmatpush3.bf16.msra.mxu1 %v2889_v8  ;;  %2619 = vmatprep.subr.bf16.mxu0 %v2890_v9  ;;  %v97_v8 = vpack.c.bf16 %v73_v6, %v73_v6  ;;  %v2938_v9 = vld [vmem:[#allocation5 + $0x540] sm:$0xff]  }
  0x99   :  { %2641 = vmatprep.subr.bf16.mxu1 %v2891_v10  ;;  %v2939_v10 = vld [vmem:[#allocation5 + $0x5c0] sm:$0xff]  }
  0x9b   :  { %2620 = vmatpush3.bf16.msra.mxu0 %v2892_v11  ;;  %v2940_v11 = vld [vmem:[#allocation5 + $0x500] sm:$0xff]  }
  0x9c   :  { %2642 = vmatpush3.bf16.msra.mxu1 %v2893_v12  ;;  %2621 = vmatprep.subr.bf16.mxu0 %v2894_v13  ;;  %v2941_v12 = vld [vmem:[#allocation5 + $0x580] sm:$0xff]   ;;  %v2942_v13 = vld [vmem:[#allocation5 + $0x548] sm:$0xff]  }
  0x9d   :  { %2643 = vmatprep.subr.bf16.mxu1 %v2895_v14  ;;  %v2943_v14 = vld [vmem:[#allocation5 + $0x5c8] sm:$0xff]  }
  0x9f   :  { %2622 = vmatpush3.bf16.msra.mxu0 %v2896_v15  ;;  %v2944_v15 = vld [vmem:[#allocation5 + $0x508] sm:$0xff]  }
  0xa0   :  { %2644 = vmatpush3.bf16.msra.mxu1 %v2897_v16  ;;  %2623 = vmatprep.subr.bf16.mxu0 %v2898_v17  ;;  %v2945_v16 = vld [vmem:[#allocation5 + $0x588] sm:$0xff]   ;;  %v2946_v17 = vld [vmem:[#allocation5 + $0x550] sm:$0xff]  }
  0xa1   :  { %2645 = vmatprep.subr.bf16.mxu1 %v2899_v18  ;;  %v2947_v18 = vld [vmem:[#allocation5 + $0x5d0] sm:$0xff]  }
  0xa3   :  { %2624 = vmatpush3.bf16.msra.mxu0 %v2900_v19  ;;  %v2948_v19 = vld [vmem:[#allocation5 + $0x510] sm:$0xff]  }
  0xa4   :  { %2646 = vmatpush3.bf16.msra.mxu1 %v2901_v20  ;;  %2625 = vmatprep.subr.bf16.mxu0 %v2902_v21  ;;  %v2949_v20 = vld [vmem:[#allocation5 + $0x590] sm:$0xff]   ;;  %v2950_v21 = vld [vmem:[#allocation5 + $0x558] sm:$0xff]  }
  0xa5   :  { %2647 = vmatprep.subr.bf16.mxu1 %v2903_v22  ;;  %v2951_v22 = vld [vmem:[#allocation5 + $0x5d8] sm:$0xff]  }
  0xa7   :  { %2626 = vmatpush3.bf16.msra.mxu0 %v2904_v23  ;;  %v2952_v23 = vld [vmem:[#allocation5 + $0x518] sm:$0xff]  }
  0xa8   :  { %2648 = vmatpush3.bf16.msra.mxu1 %v2905_v24  ;;  %2655 = vmatprep.subr.bf16.mxu0 %v2906_v33  ;;  %v2953_v24 = vld [vmem:[#allocation5 + $0x598] sm:$0xff]   ;;  %v2962_v33 = vld [vmem:[#allocation5 + $0x570] sm:$0xff]  }
  0xa9   :  { %2677 = vmatprep.subr.bf16.mxu1 %v2907_v34  ;;  %v2963_v34 = vld [vmem:[#allocation5 + $0x5f0] sm:$0xff]  }
  0xaa   :  { %1919 = vmatmul.mubr.bf16.vlgmr.msra.gmra.mrb[12].mxu0 %v91_v30  ;;  %v2959_v30 = vld [vmem:[#allocation5 + $0x5e8] sm:$0xff]  }
  0xab   :  { %1959 = vmatmul.mubr.bf16.vlgmr.msra.gmra.mrb[12].mxu1 %v93_v32  ;;  %2656 = vmatpush3.bf16.msra.mxu0 %v2908_v35  ;;  %v2961_v32 = vld [vmem:[#allocation5 + $0x5a8] sm:$0xff]   ;;  %v2964_v35 = vld [vmem:[#allocation5 + $0x530] sm:$0xff]  }
  0xac   :  { %2678 = vmatpush3.bf16.msra.mxu1 %v2909_v36  ;;  %2657 = vmatprep.subr.bf16.mxu0 %v2910_v37  ;;  %v2965_v36 = vld [vmem:[#allocation5 + $0x5b0] sm:$0xff]   ;;  %v2966_v37 = vld [vmem:[#allocation5 + $0x578] sm:$0xff]  }
  0xad   :  { %2679 = vmatprep.subr.bf16.mxu1 %v2911_v38  ;;  %1998 = vmatprep.mubr.bf16.mxu0 %v96_v3  ;;  %v2967_v38 = vld [vmem:[#allocation5 + $0x5f8] sm:$0xff]  }
  0xae   :  { %2038 = vmatprep.mubr.bf16.mxu1 %v98_v4  ;;  %v2974_v3 = vld [vmem:[%s3149_s3 + $0x20] sm:$0xff]  }
  0xaf   :  { %2658 = vmatpush3.bf16.msra.mxu0 %v2912_v39  ;;  %v2968_v39 = vld [vmem:[#allocation5 + $0x538] sm:$0xff]  }
  0xb0   :  { %2680 = vmatpush3.bf16.msra.mxu1 %v2913_v40  ;;  %2659 = vmatprep.subr.bf16.mxu0 %v2914_v41  ;;  %v2969_v40 = vld [vmem:[#allocation5 + $0x5b8] sm:$0xff]   ;;  %v76_v41 = vld [vmem:[#allocation3 + $0xa8] sm:$0xff] }
  0xb1   :  { %2681 = vmatprep.subr.bf16.mxu1 %v2915_v42  ;;  %v100_v42 = vpack.c.bf16 %v76_v41, %v76_v41 }
  0xb3   :  { %2660 = vmatpush3.bf16.msra.mxu0 %v2916_v43  ;;  %v78_v43 = vld [vmem:[#allocation3 + $0xb8] sm:$0xff] }
  0xb4   :  { %2682 = vmatpush3.bf16.msra.mxu1 %v2917_v44  ;;  %2661 = vmatprep.subr.bf16.mxu0 %v2918_v45  ;;  %v75_v44 = vld [vmem:[#allocation3 + $0xa0] sm:$0xff]  ;;  %v77_v45 = vld [vmem:[#allocation3 + $0xb0] sm:$0xff] }
  0xb5   :  { %2683 = vmatprep.subr.bf16.mxu1 %v2919_v46  ;;  %v102_v46 = vpack.c.bf16 %v78_v43, %v78_v43 }
  0xb7   :  { %2662 = vmatpush3.bf16.msra.mxu0 %v2920_v47  ;;  %v99_v47 = vpack.c.bf16 %v75_v44, %v75_v44 }
  0xb8   :  { %2684 = vmatpush3.bf16.msra.mxu1 %v2921_v48  ;;  %2663 = vmatprep.subr.bf16.mxu0 %v2922_v49  ;;  %v101_v48 = vpack.c.bf16 %v77_v45, %v77_v45 }
  0xb9   :  { %2685 = vmatprep.subr.bf16.mxu1 %v2923_v50 }
  0xbb   :  { %2664 = vmatpush3.bf16.msra.mxu0 %v2924_v51  ;;  %v2274_v51 = vld [vmem:[%s3148_s2] ss:$0 sm:$0xff] }
  0xbc   :  { %2686 = vmatpush3.bf16.msra.mxu1 %v2925_v52  ;;  %2665 = vmatprep.subr.bf16.mxu0 %v2926_v53 }
  0xbd   :  { %2687 = vmatprep.subr.bf16.mxu1 %v2927_v54 }
  0xbf   :  { %2666 = vmatpush3.bf16.msra.mxu0 %v2928_v55 }
  0xc0   :  { %2688 = vmatpush3.bf16.msra.mxu1 %v2929_v56  ;;  %2667 = vmatprep.subr.bf16.mxu0 %v2930_v57 }
  0xc1   :  { %2689 = vmatprep.subr.bf16.mxu1 %v2931_v58 }
  0xc3   :  { %2668 = vmatpush3.bf16.msra.mxu0 %v2932_v59 }
  0xc4   :  { %2690 = vmatpush3.bf16.msra.mxu1 %v2933_v60  ;;  %2669 = vmatprep.subr.bf16.mxu0 %v2934_v61 }
  0xc5   :  { %2691 = vmatprep.subr.bf16.mxu1 %v2935_v62  ;;  %v2970_v62 = vld [vmem:[%s3149_s3] sm:$0xff]  }
  0xc7   :  { %2670 = vmatpush3.bf16.msra.mxu0 %v2936_v63  ;;  %v3034_v63 = vmov 0.0  }
  0xc8   :  { %2692 = vmatpush3.bf16.msra.mxu1 %v2937_v0  ;;  %2699 = vmatprep.subr.bf16.mxu0 %v2938_v9  ;;  %v2971_v0 = vld [vmem:[%s3149_s3 + $0x8] sm:$0xff]  }
  0xc9   :  { %2721 = vmatprep.subr.bf16.mxu1 %v2939_v10 }
  0xca   :  { %1999 = vmatmul.mubr.bf16.vlgmr.msra.gmra.mrb[16].mxu0 %v95_v7 }
  0xcb   :  { %2039 = vmatmul.mubr.bf16.vlgmr.msra.gmra.mrb[16].mxu1 %v97_v8  ;;  %2700 = vmatpush3.bf16.msra.mxu0 %v2940_v11 }
  0xcc   :  { %2722 = vmatpush3.bf16.msra.mxu1 %v2941_v12  ;;  %2701 = vmatprep.subr.bf16.mxu0 %v2942_v13 }
  0xcd   :  { %2723 = vmatprep.subr.bf16.mxu1 %v2943_v14  ;;  %2078 = vmatprep.mubr.bf16.mxu0 %v100_v42 }
  0xce   :  { %2118 = vmatprep.mubr.bf16.mxu1 %v102_v46 }
  0xcf   :  { %2702 = vmatpush3.bf16.msra.mxu0 %v2944_v15  ;;  %v2975_v15 = vld [vmem:[%s3149_s3 + $0x28] sm:$0xff]  }
  0xd0   :  { %2724 = vmatpush3.bf16.msra.mxu1 %v2945_v16  ;;  %2703 = vmatprep.subr.bf16.mxu0 %v2946_v17  ;;  %v2976_v17 = vld [vmem:[%s3149_s3 + $0x30] sm:$0xff]  }
  0xd1   :  { %2725 = vmatprep.subr.bf16.mxu1 %v2947_v18  ;;  %v2977_v18 = vld [vmem:[%s3149_s3 + $0x38] sm:$0xff]  }
  0xd3   :  { %2704 = vmatpush3.bf16.msra.mxu0 %v2948_v19 }
  0xd4   :  { %2726 = vmatpush3.bf16.msra.mxu1 %v2949_v20  ;;  %2705 = vmatprep.subr.bf16.mxu0 %v2950_v21 }
  0xd5   :  { %2727 = vmatprep.subr.bf16.mxu1 %v2951_v22 }
  0xd7   :  { %2706 = vmatpush3.bf16.msra.mxu0 %v2952_v23 }
  0xd8   :  { %2728 = vmatpush3.bf16.msra.mxu1 %v2953_v24  ;;  %2707 = vmatprep.subr.bf16.mxu0 %v2954_v25 }
  0xd9   :  { %2729 = vmatprep.subr.bf16.mxu1 %v2955_v26 }
  0xdb   :  { %2708 = vmatpush3.bf16.msra.mxu0 %v2956_v27 }
  0xdc   :  { %2730 = vmatpush3.bf16.msra.mxu1 %v2957_v28  ;;  %2709 = vmatprep.subr.bf16.mxu0 %v2958_v29 }
  0xdd   :  { %2731 = vmatprep.subr.bf16.mxu1 %v2959_v30 }
  0xdf   :  { %2710 = vmatpush3.bf16.msra.mxu0 %v2960_v31 }
  0xe0   :  { %2732 = vmatpush3.bf16.msra.mxu1 %v2961_v32  ;;  %2711 = vmatprep.subr.bf16.mxu0 %v2962_v33 }
  0xe1   :  { %2733 = vmatprep.subr.bf16.mxu1 %v2963_v34 }
  0xe3   :  { %2712 = vmatpush3.bf16.msra.mxu0 %v2964_v35 }
  0xe4   :  { %2734 = vmatpush3.bf16.msra.mxu1 %v2965_v36  ;;  %2713 = vmatprep.subr.bf16.mxu0 %v2966_v37 }
  0xe5   :  { %2735 = vmatprep.subr.bf16.mxu1 %v2967_v38 }
  0xe7   :  { %2714 = vmatpush3.bf16.msra.mxu0 %v2968_v39 }
  0xe8   :  { %2736 = vmatpush3.bf16.msra.mxu1 %v2969_v40  ;;  %2752 = vmatprep.subr.bf16.mxu0 %v3034_v63 }
  0xea   :  { %2079 = vmatmul.mubr.bf16.vlgmr.msra.gmra.mrb[20].mxu0 %v99_v47 }
  0xeb   :  { %2119 = vmatmul.mubr.bf16.vlgmr.msra.gmra.mrb[20].mxu1 %v101_v48  ;;  %2753 = vmatpush3.bf16.msra.mxu0 %v2970_v62 }
  0xec   :  { %2754 = vmatprep.subr.bf16.mxu0 %v3034_v63  ;;  %2768 = vmatprep.mubr.msk.bf16.mxu0 %vm3035_vm0, %v3034_v63 }
  0xef   :  { %2755 = vmatpush3.bf16.msra.mxu0 %v2971_v0 }
  0xf0   :  { %2756 = vmatprep.subr.bf16.mxu0 %v3034_v63 }
  0xf3   :  { %2757 = vmatpush3.bf16.msra.mxu0 %v2972_v1 }
  0xf4   :  { %2758 = vmatprep.subr.bf16.mxu0 %v3034_v63 }
  0xf7   :  { %2759 = vmatpush3.bf16.msra.mxu0 %v2973_v2 }
  0xf8   :  { %2760 = vmatprep.subr.bf16.mxu0 %v3034_v63 }
  0xfb   :  { %2761 = vmatpush3.bf16.msra.mxu0 %v2974_v3 }
  0xfc   :  { %2762 = vmatprep.subr.bf16.mxu0 %v3034_v63 }
  0xff   :  { %2763 = vmatpush3.bf16.msra.mxu0 %v2975_v15  ;;  %v2477_v15 = vld [vmem:[#allocation2] ss:$0 sm:$0xff] }
 0x100   :  { %2764 = vmatprep.subr.bf16.mxu0 %v3034_v63 }
 0x103   :  { %2765 = vmatpush3.bf16.msra.mxu0 %v2976_v17 }
 0x104   :  { %2766 = vmatprep.subr.bf16.mxu0 %v3034_v63 }
 0x107   :  { %2767 = vmatpush3.bf16.msra.mxu0 %v2977_v18 }
 0x11d   :  { %v2495_v49 = vpop.f32.mrb[0].mxu0 }
 0x11e   :  { %v2517_v50 = vpop.f32.mrb[0].mxu1  ;;  %v2496_v52 = vpop.f32.mrb[1].mxu0 }
 0x11f   :  { %v2518_v53 = vpop.f32.mrb[1].mxu1  ;;  %v2497_v54 = vadd.f32 %v2496_v52, %v2495_v49  ;;  %v2498_v56 = vpop.f32.mrb[2].mxu0 }
 0x120   :  { %v2519_v55 = vadd.f32 %v2518_v53, %v2517_v50  ;;  %v2520_v57 = vpop.f32.mrb[2].mxu1  ;;  %v2499_v58 = vpop.f32.mrb[3].mxu0 }
 0x121   :  { %v2521_v59 = vpop.f32.mrb[3].mxu1  ;;  %v1681_v60 = vadd.f32 %v2497_v54, %v2274_v51 }
 0x123   :  { %v1721_v61 = vadd.f32 %v2519_v55, %v1681_v60 }
 0x13d   :  { %v2539_v4 = vpop.f32.mrb[4].mxu0 }
 0x13e   :  { %v2561_v5 = vpop.f32.mrb[4].mxu1  ;;  %v2540_v6 = vpop.f32.mrb[5].mxu0 }
 0x13f   :  { %v2541_v7 = vadd.f32 %v2540_v6, %v2539_v4  ;;  %v2562_v8 = vpop.f32.mrb[5].mxu1  ;;  %v2542_v9 = vpop.f32.mrb[6].mxu0 }
 0x140   :  { %v2563_v10 = vadd.f32 %v2562_v8, %v2561_v5  ;;  %v2564_v11 = vpop.f32.mrb[6].mxu1  ;;  %v2543_v12 = vpop.f32.mrb[7].mxu0  ;;  %v2467_v5 = vld [vmem:[%s3150_s4] ss:$0 sm:$0xff] }
 0x141   :  { %v1761_v13 = vadd.f32 %v2541_v7, %v1721_v61  ;;  %v2565_v14 = vpop.f32.mrb[7].mxu1 }
 0x143   :  { %v1801_v16 = vadd.f32 %v2563_v10, %v1761_v13  ;;  %v2476_v10 = vld [vmem:[%s3151_s5] ss:$0 sm:$0xff] }
 0x15d   :  { %v2583_v19 = vpop.f32.mrb[8].mxu0 }
 0x15e   :  { %v2605_v20 = vpop.f32.mrb[8].mxu1  ;;  %v2584_v21 = vpop.f32.mrb[9].mxu0 }
 0x15f   :  { %v2585_v22 = vadd.f32 %v2584_v21, %v2583_v19  ;;  %v2606_v23 = vpop.f32.mrb[9].mxu1  ;;  %v2586_v24 = vpop.f32.mrb[10].mxu0 }
 0x160   :  { %v2607_v25 = vadd.f32 %v2606_v23, %v2605_v20  ;;  %v2608_v26 = vpop.f32.mrb[10].mxu1  ;;  %v2587_v27 = vpop.f32.mrb[11].mxu0 }
 0x161   :  { %v1841_v28 = vadd.f32 %v2585_v22, %v1801_v16  ;;  %v2609_v29 = vpop.f32.mrb[11].mxu1 }
 0x163   :  { %v1881_v30 = vadd.f32 %v2607_v25, %v1841_v28 }
 0x17d   :  { %v2627_v31 = vpop.f32.mrb[12].mxu0 }
 0x17e   :  { %v2649_v32 = vpop.f32.mrb[12].mxu1  ;;  %v2628_v33 = vpop.f32.mrb[13].mxu0 }
 0x17f   :  { %v2650_v34 = vpop.f32.mrb[13].mxu1  ;;  %v2629_v35 = vadd.f32 %v2628_v33, %v2627_v31  ;;  %v2630_v37 = vpop.f32.mrb[14].mxu0 }
 0x180   :  { %v2651_v36 = vadd.f32 %v2650_v34, %v2649_v32  ;;  %v2652_v38 = vpop.f32.mrb[14].mxu1  ;;  %v2631_v39 = vpop.f32.mrb[15].mxu0 }
 0x181   :  { %v2653_v40 = vpop.f32.mrb[15].mxu1  ;;  %v1921_v41 = vadd.f32 %v2629_v35, %v1881_v30 }
 0x183   :  { %v1961_v42 = vadd.f32 %v2651_v36, %v1921_v41 }
 0x19d   :  { %v2671_v43 = vpop.f32.mrb[16].mxu0 }
 0x19e   :  { %v2693_v44 = vpop.f32.mrb[16].mxu1  ;;  %v2672_v45 = vpop.f32.mrb[17].mxu0 }
 0x19f   :  { %v2673_v46 = vadd.f32 %v2672_v45, %v2671_v43  ;;  %v2694_v47 = vpop.f32.mrb[17].mxu1  ;;  %v2674_v48 = vpop.f32.mrb[18].mxu0 }
 0x1a0   :  { %v2695_v49 = vadd.f32 %v2694_v47, %v2693_v44  ;;  %v2696_v50 = vpop.f32.mrb[18].mxu1  ;;  %v2675_v51 = vpop.f32.mrb[19].mxu0 }
 0x1a1   :  { %v2001_v52 = vadd.f32 %v2673_v46, %v1961_v42  ;;  %v2697_v53 = vpop.f32.mrb[19].mxu1 }
 0x1a3   :  { %v2041_v54 = vadd.f32 %v2695_v49, %v2001_v52 }
 0x1bd   :  { %v2715_v55 = vpop.f32.mrb[20].mxu0 }
 0x1be   :  { %v2737_v56 = vpop.f32.mrb[20].mxu1  ;;  %v2716_v57 = vpop.f32.mrb[21].mxu0 }
 0x1bf   :  { %v2717_v58 = vadd.f32 %v2716_v57, %v2715_v55  ;;  %v2738_v59 = vpop.f32.mrb[21].mxu1  ;;  %v2718_v60 = vpop.f32.mrb[22].mxu0 }
 0x1c0   :  { %v2739_v61 = vadd.f32 %v2738_v59, %v2737_v56  ;;  %v2740_v62 = vpop.f32.mrb[22].mxu1  ;;  %v2719_v63 = vpop.f32.mrb[23].mxu0 }
 0x1c1   :  { %v2081_v0 = vadd.f32 %v2717_v58, %v2041_v54  ;;  %v2741_v1 = vpop.f32.mrb[23].mxu1 }
 0x1c3   :  { %v2121_v2 = vadd.f32 %v2739_v61, %v2081_v0 }
 0x1c5   :  { %v2126_v3 = vmax.f32 %v2121_v2, 0.0 }
 0x1c7   :  { %v2127_v4 = vpack.c.bf16 %v2126_v3, %v2126_v3 }
 0x1c9   :  { %2769 = vmatmul.mubr.bf16.vlgmr.msra.gmra.mrb[24].mxu0 %v2127_v4 }
 0x29c   :  { %v2233_v6 = vpop.f32.mrb[24].mxu0 }
 0x29d   :  { %v2234_v7 = vadd.f32 %v2467_v5, %v2233_v6  ;;  %v2770_v8 = vpop.f32.mrb[25].mxu0 }
 0x29e   :  { %v2236_v9 = vpop.f32.mrb[26].mxu0 }
 0x29f   :  { %v2239_v11 = vmax.f32 %v2234_v7, 0.0  ;;  %v2771_v12 = vpop.f32.mrb[27].mxu0 }
 0x2a1   :  { %v2247_v13 = vmul.f32 %v2476_v10, %v2239_v11 }
 0x2a3   :  { %v2249_v14 = vsel %vm2248_vm1, %v2247_v13, 0.0 }
 0x2a4   :  { %2250 = vadd.xlane.f32.xlu0 %v2249_v14 }
 0x331   :  { %v2251_v16 = vpop.xlane.xlu0 %2250 }
 0x332   :  { %v2259_v17 = vadd.f32 %v2477_v15, %v2251_v16 }
 0x334   :  { %v2478_v18 = vmul.f32 -1.442695, %v2259_v17 }
 0x336   :  { %2978 = vpow2.f32 %v2478_v18 }
 0x340   :  { %v2979_v19 = vpop.eup %2978 }
 0x341   :  { %v2263_v20 = vadd.f32 1.0, %v2979_v19 }
 0x343   :  { %2980 = vrcp.f32 %v2263_v20 }
 0x34d   :  { %v2981_v21 = vpop.eup %2980 }
 0x34e   :  { %2267 = vst.msk [vmem:[%s3153_s7] sm:$0xff] %vm2266_vm2, %v2981_v21 }
 0x34f   :  { %2272 = vsyncpa [#allocation4], 1 }
 0x350   :  { %2273 = vsyncpa [#allocation6], 1 }

</bundles_post_ra>
